<compile_context>
chip_gen: v6e
topology: v6e:2x2x1
jax: 0.10.0
libtpu: 0.0.40
codegen_flags: <defaults>
</compile_context>

<pallas_src>
import math

import jax
import jax.numpy as jnp
from jax.experimental import pallas as pl
from jax.experimental.pallas import tpu as pltpu

LANE = 128
SUBLANE = 8


# ----------------------------------------------------------------------------
# Fused MLP kernel: (Linear+Sigmoid) x3 -> Linear, for one batch tile.
# ----------------------------------------------------------------------------
def fused_mlp_kernel(x_ref, w1_ref, b1_ref, w2_ref, b2_ref,
                     w3_ref, b3_ref, w4_ref, b4_ref, o_ref):
    """x_ref: (TB, N_in); w*_ref pre-transposed (in, out); b*_ref (1, out).

    o_ref: (TB, OUT_PAD) with OUT_PAD a multiple of 128 (lane-dense store);
    columns >= N_out are zero because the last weight/bias are zero-padded.
    """
    def sigmoid(v):
        # exact logistic; exp lowers to the EUP (separate issue slot)
        return 1.0 / (1.0 + jnp.exp(-v))

    h = jnp.dot(x_ref[...], w1_ref[...], preferred_element_type=jnp.float32)
    h = sigmoid(h + b1_ref[...])
    h = jnp.dot(h, w2_ref[...], preferred_element_type=jnp.float32)
    h = sigmoid(h + b2_ref[...])
    h = jnp.dot(h, w3_ref[...], preferred_element_type=jnp.float32)
    h = sigmoid(h + b3_ref[...])
    h = jnp.dot(h, w4_ref[...], preferred_element_type=jnp.float32)
    o_ref[...] = (h + b4_ref[...]).astype(o_ref.dtype)


# ----------------------------------------------------------------------------
# Wrapper: single pallas_call over the whole forward pass.
# ----------------------------------------------------------------------------
def reg_model_forward(x, params, *, block_b=256):
    w1t, b1 = params["w1t"], params["b1"]
    w2t, b2 = params["w2t"], params["b2"]
    w3t, b3 = params["w3t"], params["b3"]
    w4t, b4 = params["w4t"], params["b4"]

    x = x.astype(jnp.float32)
    B, n_in = x.shape
    n_h1 = w1t.shape[1]
    n_h2 = w2t.shape[1]
    n_h3 = w3t.shape[1]
    n_out = w4t.shape[1]

    # Lane-dense output: zero-pad the last layer's out-features to a multiple
    # of 128 so the final store is an unmasked full-lane vst; slice in wrapper.
    out_pad = pl.cdiv(n_out, LANE) * LANE
    w4t_p = jnp.zeros((n_h3, out_pad), jnp.float32).at[:, :n_out].set(w4t)
    b4_p = jnp.zeros((1, out_pad), jnp.float32).at[:, :n_out].set(b4)

    # Batch tiling: whole batch per block when small; tile at block_b rows for
    # large batches (keeps per-block VMEM small on v7x's 64 MiB and lets the
    # "parallel" grid axis shard across v7x's two TensorCores).
    if B <= block_b:
        tb = max(B, 1)
        b_pad = B
    else:
        tb = block_b
        b_pad = pl.cdiv(B, tb) * tb

    x_in = x
    if b_pad != B:
        # Pad with zero rows to a tile-aligned batch; padded rows are discarded
        # after the kernel (sigmoid(0*W+b) etc. are finite, just unused).
        x_in = jnp.zeros((b_pad, n_in), jnp.float32).at[:B].set(x)

    grid = (b_pad // tb,)

    out = pl.pallas_call(
        fused_mlp_kernel,
        out_shape=jax.ShapeDtypeStruct((b_pad, out_pad), jnp.float32),
        grid=grid,
        in_specs=[
            pl.BlockSpec((tb, n_in), lambda i: (i, 0)),       # x batch tile
            pl.BlockSpec((n_in, n_h1), lambda i: (0, 0)),     # W1^T
            pl.BlockSpec((1, n_h1), lambda i: (0, 0)),        # b1
            pl.BlockSpec((n_h1, n_h2), lambda i: (0, 0)),     # W2^T
            pl.BlockSpec((1, n_h2), lambda i: (0, 0)),        # b2
            pl.BlockSpec((n_h2, n_h3), lambda i: (0, 0)),     # W3^T
            pl.BlockSpec((1, n_h3), lambda i: (0, 0)),        # b3
            pl.BlockSpec((n_h3, out_pad), lambda i: (0, 0)),  # W_out^T (padded)
            pl.BlockSpec((1, out_pad), lambda i: (0, 0)),     # b_out (padded)
        ],
        out_specs=pl.BlockSpec((tb, out_pad), lambda i: (i, 0)),
        compiler_params=pltpu.CompilerParams(
            # batch tiles are independent -> shard across v7x's 2 TCs;
            # harmless no-op on v5e/v6e.
            dimension_semantics=("parallel",)),
    )(x_in, w1t, b1, w2t, b2, w3t, b3, w4t_p, b4_p)

    return out[:B, :n_out]


# ----------------------------------------------------------------------------
# Pure-JAX reference (for correctness check) and PyTorch-style init.
# ----------------------------------------------------------------------------
def reg_model_reference(x, p):
    h = jax.nn.sigmoid(x @ p["w1t"] + p["b1"])
    h = jax.nn.sigmoid(h @ p["w2t"] + p["b2"])
    h = jax.nn.sigmoid(h @ p["w3t"] + p["b3"])
    return h @ p["w4t"] + p["b4"]


def init_params(key, n_input, n_h1, n_h2, n_h3, n_out):
    """PyTorch nn.Linear default init; weights stored pre-transposed (in, out)."""
    def linear(k, fan_in, fan_out):
        kw, kb = jax.random.split(k)
        bound = 1.0 / math.sqrt(fan_in)
        wt = jax.random.uniform(kw, (fan_in, fan_out), jnp.float32, -bound, bound)
        b = jax.random.uniform(kb, (1, fan_out), jnp.float32, -bound, bound)
        return wt, b

    k1, k2, k3, k4 = jax.random.split(key, 4)
    w1t, b1 = linear(k1, n_input, n_h1)
    w2t, b2 = linear(k2, n_h1, n_h2)
    w3t, b3 = linear(k3, n_h2, n_h3)
    w4t, b4 = linear(k4, n_h3, n_out)
    return {"w1t": w1t, "b1": b1, "w2t": w2t, "b2": b2,
            "w3t": w3t, "b3": b3, "w4t": w4t, "b4": b4}


# ----------------------------------------------------------------------------
if __name__ == "__main__":
    # Small shapes consistent with reg_model(N_input, N_h1, N_h2, N_h3, N_out).
    batch, n_input, n_h1, n_h2, n_h3, n_out = 8, 16, 32, 32, 16, 4

    root = jax.random.PRNGKey(0)
    k_x, k_p = jax.random.split(root)
    x = jax.random.normal(k_x, (batch, n_input), jnp.float32)
    params = init_params(k_p, n_input, n_h1, n_h2, n_h3, n_out)

    out = reg_model_forward(x, params)
    out = jax.block_until_ready(out)

    assert out.shape == (batch, n_out), out.shape
    assert bool(jnp.all(jnp.isfinite(out)))

    ref = reg_model_reference(x, params)
    assert bool(jnp.allclose(out, ref, rtol=1e-5, atol=1e-5)), (
        float(jnp.max(jnp.abs(out - ref))))

    print("KERNEL_OK")
</pallas_src>

<mosaic_0001>
module attributes {stable_mosaic.version = 11 : i64} {
  func.func @fused_mlp_kernel(%arg0: i32, %arg1: memref<8x16xf32, #tpu.memory_space<vmem>>, %arg2: memref<16x32xf32, #tpu.memory_space<vmem>>, %arg3: memref<1x32xf32, #tpu.memory_space<vmem>>, %arg4: memref<32x32xf32, #tpu.memory_space<vmem>>, %arg5: memref<1x32xf32, #tpu.memory_space<vmem>>, %arg6: memref<32x16xf32, #tpu.memory_space<vmem>>, %arg7: memref<1x16xf32, #tpu.memory_space<vmem>>, %arg8: memref<16x128xf32, #tpu.memory_space<vmem>>, %arg9: memref<1x128xf32, #tpu.memory_space<vmem>>, %arg10: memref<8x128xf32, #tpu.memory_space<vmem>>) attributes {dimension_semantics = [#tpu.dimension_semantics<parallel>], iteration_bounds = array<i64: 1>, scalar_prefetch = 0 : i64, scratch_operands = 0 : i64, tpu.core_type = #tpu.core_type<tc>, window_params = [{transform_indices = @transform_0, window_bounds = array<i64: 8, 16>}, {pipeline_mode = #tpu.pipeline_mode<synchronous>, transform_indices = @transform_1, window_bounds = array<i64: 16, 32>}, {pipeline_mode = #tpu.pipeline_mode<synchronous>, transform_indices = @transform_2, window_bounds = array<i64: 1, 32>}, {pipeline_mode = #tpu.pipeline_mode<synchronous>, transform_indices = @transform_3, window_bounds = array<i64: 32, 32>}, {pipeline_mode = #tpu.pipeline_mode<synchronous>, transform_indices = @transform_4, window_bounds = array<i64: 1, 32>}, {pipeline_mode = #tpu.pipeline_mode<synchronous>, transform_indices = @transform_5, window_bounds = array<i64: 32, 16>}, {pipeline_mode = #tpu.pipeline_mode<synchronous>, transform_indices = @transform_6, window_bounds = array<i64: 1, 16>}, {pipeline_mode = #tpu.pipeline_mode<synchronous>, transform_indices = @transform_7, window_bounds = array<i64: 16, 128>}, {pipeline_mode = #tpu.pipeline_mode<synchronous>, transform_indices = @transform_8, window_bounds = array<i64: 1, 128>}, {transform_indices = @transform_9, window_bounds = array<i64: 8, 128>}]} {
    %c0 = arith.constant 0 : index
    %c0_0 = arith.constant 0 : index
    %0 = vector.load %arg1[%c0, %c0_0] : memref<8x16xf32, #tpu.memory_space<vmem>>, vector<8x16xf32>
    %c0_1 = arith.constant 0 : index
    %c0_2 = arith.constant 0 : index
    %1 = vector.load %arg2[%c0_1, %c0_2] : memref<16x32xf32, #tpu.memory_space<vmem>>, vector<16x32xf32>
    %cst = arith.constant dense<0.000000e+00> : vector<8x32xf32>
    %2 = tpu.matmul %0, %1, %cst {dimension_numbers = #tpu.dot_dimension_numbers<[1], [0], [0], [1], [0, 0, 1, 1], [], []>} : vector<8x16xf32>, vector<16x32xf32>, vector<8x32xf32> -> vector<8x32xf32>
    %c0_3 = arith.constant 0 : index
    %c0_4 = arith.constant 0 : index
    %3 = vector.load %arg3[%c0_3, %c0_4] : memref<1x32xf32, #tpu.memory_space<vmem>>, vector<1x32xf32>
    %4 = vector.broadcast %3 : vector<1x32xf32> to vector<8x32xf32>
    %5 = arith.addf %2, %4 : vector<8x32xf32>
    %cst_5 = arith.constant 0.000000e+00 : f32
    %6 = vector.broadcast %cst_5 : f32 to vector<8x32xf32>
    %7 = arith.subf %6, %5 : vector<8x32xf32>
    %8 = math.exp %7 : vector<8x32xf32>
    %cst_6 = arith.constant 1.000000e+00 : f32
    %9 = vector.broadcast %cst_6 : f32 to vector<8x32xf32>
    %10 = arith.addf %9, %8 : vector<8x32xf32>
    %cst_7 = arith.constant 1.000000e+00 : f32
    %11 = vector.broadcast %cst_7 : f32 to vector<8x32xf32>
    %12 = arith.divf %11, %10 : vector<8x32xf32>
    %c0_8 = arith.constant 0 : index
    %c0_9 = arith.constant 0 : index
    %13 = vector.load %arg4[%c0_8, %c0_9] : memref<32x32xf32, #tpu.memory_space<vmem>>, vector<32x32xf32>
    %cst_10 = arith.constant dense<0.000000e+00> : vector<8x32xf32>
    %14 = tpu.matmul %12, %13, %cst_10 {dimension_numbers = #tpu.dot_dimension_numbers<[1], [0], [0], [1], [0, 0, 1, 1], [], []>} : vector<8x32xf32>, vector<32x32xf32>, vector<8x32xf32> -> vector<8x32xf32>
    %c0_11 = arith.constant 0 : index
    %c0_12 = arith.constant 0 : index
    %15 = vector.load %arg5[%c0_11, %c0_12] : memref<1x32xf32, #tpu.memory_space<vmem>>, vector<1x32xf32>
    %16 = vector.broadcast %15 : vector<1x32xf32> to vector<8x32xf32>
    %17 = arith.addf %14, %16 : vector<8x32xf32>
    %cst_13 = arith.constant 0.000000e+00 : f32
    %18 = vector.broadcast %cst_13 : f32 to vector<8x32xf32>
    %19 = arith.subf %18, %17 : vector<8x32xf32>
    %20 = math.exp %19 : vector<8x32xf32>
    %cst_14 = arith.constant 1.000000e+00 : f32
    %21 = vector.broadcast %cst_14 : f32 to vector<8x32xf32>
    %22 = arith.addf %21, %20 : vector<8x32xf32>
    %cst_15 = arith.constant 1.000000e+00 : f32
    %23 = vector.broadcast %cst_15 : f32 to vector<8x32xf32>
    %24 = arith.divf %23, %22 : vector<8x32xf32>
    %c0_16 = arith.constant 0 : index
    %c0_17 = arith.constant 0 : index
    %25 = vector.load %arg6[%c0_16, %c0_17] : memref<32x16xf32, #tpu.memory_space<vmem>>, vector<32x16xf32>
    %cst_18 = arith.constant dense<0.000000e+00> : vector<8x16xf32>
    %26 = tpu.matmul %24, %25, %cst_18 {dimension_numbers = #tpu.dot_dimension_numbers<[1], [0], [0], [1], [0, 0, 1, 1], [], []>} : vector<8x32xf32>, vector<32x16xf32>, vector<8x16xf32> -> vector<8x16xf32>
    %c0_19 = arith.constant 0 : index
    %c0_20 = arith.constant 0 : index
    %27 = vector.load %arg7[%c0_19, %c0_20] : memref<1x16xf32, #tpu.memory_space<vmem>>, vector<1x16xf32>
    %28 = vector.broadcast %27 : vector<1x16xf32> to vector<8x16xf32>
    %29 = arith.addf %26, %28 : vector<8x16xf32>
    %cst_21 = arith.constant 0.000000e+00 : f32
    %30 = vector.broadcast %cst_21 : f32 to vector<8x16xf32>
    %31 = arith.subf %30, %29 : vector<8x16xf32>
    %32 = math.exp %31 : vector<8x16xf32>
    %cst_22 = arith.constant 1.000000e+00 : f32
    %33 = vector.broadcast %cst_22 : f32 to vector<8x16xf32>
    %34 = arith.addf %33, %32 : vector<8x16xf32>
    %cst_23 = arith.constant 1.000000e+00 : f32
    %35 = vector.broadcast %cst_23 : f32 to vector<8x16xf32>
    %36 = arith.divf %35, %34 : vector<8x16xf32>
    %c0_24 = arith.constant 0 : index
    %c0_25 = arith.constant 0 : index
    %37 = vector.load %arg8[%c0_24, %c0_25] : memref<16x128xf32, #tpu.memory_space<vmem>>, vector<16x128xf32>
    %cst_26 = arith.constant dense<0.000000e+00> : vector<8x128xf32>
    %38 = tpu.matmul %36, %37, %cst_26 {dimension_numbers = #tpu.dot_dimension_numbers<[1], [0], [0], [1], [0, 0, 1, 1], [], []>} : vector<8x16xf32>, vector<16x128xf32>, vector<8x128xf32> -> vector<8x128xf32>
    %c0_27 = arith.constant 0 : index
    %c0_28 = arith.constant 0 : index
    %39 = vector.load %arg9[%c0_27, %c0_28] : memref<1x128xf32, #tpu.memory_space<vmem>>, vector<1x128xf32>
    %40 = vector.broadcast %39 : vector<1x128xf32> to vector<8x128xf32>
    %41 = arith.addf %38, %40 : vector<8x128xf32>
    %c0_29 = arith.constant 0 : index
    %c0_30 = arith.constant 0 : index
    %42 = vector.load %arg10[%c0_29, %c0_30] : memref<8x128xf32, #tpu.memory_space<vmem>>, vector<8x128xf32>
    tpu.vector_store %arg10[%c0_29, %c0_30], %41 {strides = array<i32>} : memref<8x128xf32, #tpu.memory_space<vmem>>, vector<8x128xf32>,
    return
  }
  func.func @transform_0(%arg0: i32) -> (i32, i32) {
    %c0_i32 = arith.constant 0 : i32
    %c0_i32_0 = arith.constant 0 : i32
    return %arg0, %c0_i32 : i32, i32
  }
  func.func @transform_1(%arg0: i32) -> (i32, i32) {
    %c0_i32 = arith.constant 0 : i32
    %c0_i32_0 = arith.constant 0 : i32
    %c0_i32_1 = arith.constant 0 : i32
    return %c0_i32, %c0_i32_0 : i32, i32
  }
  func.func @transform_2(%arg0: i32) -> (i32, i32) {
    %c0_i32 = arith.constant 0 : i32
    %c0_i32_0 = arith.constant 0 : i32
    %c0_i32_1 = arith.constant 0 : i32
    return %c0_i32, %c0_i32_0 : i32, i32
  }
  func.func @transform_3(%arg0: i32) -> (i32, i32) {
    %c0_i32 = arith.constant 0 : i32
    %c0_i32_0 = arith.constant 0 : i32
    %c0_i32_1 = arith.constant 0 : i32
    return %c0_i32, %c0_i32_0 : i32, i32
  }
  func.func @transform_4(%arg0: i32) -> (i32, i32) {
    %c0_i32 = arith.constant 0 : i32
    %c0_i32_0 = arith.constant 0 : i32
    %c0_i32_1 = arith.constant 0 : i32
    return %c0_i32, %c0_i32_0 : i32, i32
  }
  func.func @transform_5(%arg0: i32) -> (i32, i32) {
    %c0_i32 = arith.constant 0 : i32
    %c0_i32_0 = arith.constant 0 : i32
    %c0_i32_1 = arith.constant 0 : i32
    return %c0_i32, %c0_i32_0 : i32, i32
  }
  func.func @transform_6(%arg0: i32) -> (i32, i32) {
    %c0_i32 = arith.constant 0 : i32
    %c0_i32_0 = arith.constant 0 : i32
    %c0_i32_1 = arith.constant 0 : i32
    return %c0_i32, %c0_i32_0 : i32, i32
  }
  func.func @transform_7(%arg0: i32) -> (i32, i32) {
    %c0_i32 = arith.constant 0 : i32
    %c0_i32_0 = arith.constant 0 : i32
    %c0_i32_1 = arith.constant 0 : i32
    return %c0_i32, %c0_i32_0 : i32, i32
  }
  func.func @transform_8(%arg0: i32) -> (i32, i32) {
    %c0_i32 = arith.constant 0 : i32
    %c0_i32_0 = arith.constant 0 : i32
    %c0_i32_1 = arith.constant 0 : i32
    return %c0_i32, %c0_i32_0 : i32, i32
  }
  func.func @transform_9(%arg0: i32) -> (i32, i32) {
    %c0_i32 = arith.constant 0 : i32
    %c0_i32_0 = arith.constant 0 : i32
    return %arg0, %c0_i32 : i32, i32
  }
}

</mosaic_0001>

<bundles_post_ra>
// kernel: tpu_custom_call.1
= control target key start
LH: loop header
LB: loop body
LE: loop exit
PB: predicated region body
PF: predicated region fallthrough
CT: control target
= control target key end

     0   :  { %14 = vsyncpa [#allocation3], 0  ;;  %s706_s0 = inlined_call_operand.hbm [shape: f32[8,16], index: 0, kind: input, shape index: {}]   ;;  %s707_s1 = inlined_call_operand.vmem [shape: f32[16,32], index: 1, kind: input, shape index: {}]   ;;  %s708_s2 = inlined_call_operand.vmem [shape: f32[1,32], index: 2, kind: input, shape index: {}]   ;;  %s709_s3 = inlined_call_operand.vmem [shape: f32[32,32], index: 3, kind: input, shape index: {}]   ;;  %s710_s4 = inlined_call_operand.vmem [shape: f32[1,32], index: 4, kind: input, shape index: {}]   ;;  %s711_s5 = inlined_call_operand.vmem [shape: f32[32,16], index: 5, kind: input, shape index: {}]   ;;  %s712_s6 = inlined_call_operand.vmem [shape: f32[1,16], index: 6, kind: input, shape index: {}]   ;;  %s713_s7 = inlined_call_operand.hbm [shape: f32[16,128], index: 7, kind: input, shape index: {}]   ;;  %s714_s8 = inlined_call_operand.vmem [shape: f32[1,128], index: 8, kind: input, shape index: {}]   ;;  %s715_s9 = inlined_call_operand.hbm [shape: f32[8,128], index: 9, kind: output, shape index: {}]  }
   0x1   :  { %15 = vsyncpa [#allocation6], 0 }
   0x2   :  { %16 = vsyncpa [#allocation4], 0  ;;  %s574_s30 = smov [#allocation2]   ;;  %s575_s11 = smov [#allocation5]  }
   0x3   :  { %s23_s10 = sshll.u32 %s574_s30, 4  ;;  %s44_s12 = sshll.u32 %s575_s11, 4  ;;  %s24_s10 = int_to_ptr.vmem [resolvable:$true] %s23_s10  ;;  %s45_s12 = int_to_ptr.vmem [resolvable:$true] %s44_s12 }
   0x4   :  { %s516_s13 = scalar_lea.vmem %s24_s10, 128  ;;  %p521_p1 = scmp.lt.s32.totalorder %s24_s10, %s24_s10 }
   0x5   :  { %p517_p0 = scmp.ne.s32.totalorder %s24_s10, %s516_s13  ;;  %p522_p2 = scmp.lt.s32.totalorder %s516_s13, %s516_s13 }
   0x7   :  { %p523_p3 = por %p522_p2, %p521_p1 }
   0x9   :  { %p524_p4 = pnand %p523_p3, %p517_p0 }
   0xb   :  { %527 = shalt.err (!%p524_p4)
}
   0xc   :  { %26 = dma.hbm_to_vmem [thread:$0]  %s706_s0, 128, %s24_s10, [#allocation3]  }
   0xd   :  { %s536_s16 = scalar_lea.vmem %s45_s12, 256  ;;  %p541_p6 = scmp.lt.s32.totalorder %s45_s12, %s45_s12 }
   0xe   :  { %p537_p5 = scmp.ne.s32.totalorder %s45_s12, %s536_s16  ;;  %p542_p7 = scmp.lt.s32.totalorder %s536_s16, %s536_s16 }
  0x10   :  { %p543_p8 = por %p542_p7, %p541_p6 }
  0x12   :  { %p544_p9 = pnand %p543_p8, %p537_p5 }
  0x14   :  { %547 = shalt.err (!%p544_p9)
}
  0x15   :  { %s576_s17 = smov 128   ;;  %s577_s18 = smov 8  }
  0x16   :  { %50 = dma.hbm_to_vmem [thread:$0]  %s713_s7, 256, %s45_s12, [#allocation6], %s576_s17, %s576_s17, %s577_s18  }
  0x17   :  { %568 = dma.done.wait [#allocation3], 128  }
  0x18   :  { %569 = vsyncadd [#allocation3], 4294967168 }
  0x19   :  { %570 = dma.done.wait [#allocation6], 256  }
  0x1a   :  { %571 = vsyncadd [#allocation6], 4294967040  ;;  %v578_v0 = vmov 0.0   ;;  %vm579_vm0 = vmmov 0   ;;  %v61_v1 = vld [vmem:[%s707_s1 + $0x8] sm:$0xff]  ;;  %v60_v2 = vld [vmem:[%s707_s1] sm:$0xff] }
  0x1b   :  { %453 = vmatprep.subr.mxu0 %v578_v0  ;;  %457 = vmatprep.mubr.msk.f32.mxu0 %vm579_vm0, %v578_v0  ;;  %v59_v3 = vld [vmem:[#allocation2] sm:$0xff]  ;;  %vm69_vm1 = vcmask 130048   ;;  %v152_v4 = vld [vmem:[%s709_s3 + $0x18] sm:$0xff]  ;;  %v151_v5 = vld [vmem:[%s709_s3 + $0x10] sm:$0xff]  ;;  %vm160_vm2 = vcmask 261120   ;;  %s580_s0 = smov [#allocation7]  }
  0x1c   :  { %460 = vmatprep.subr.mxu1 %v578_v0  ;;  %468 = vmatprep.mubr.msk.f32.mxu1 %vm579_vm0, %v578_v0  ;;  %v150_v6 = vld [vmem:[%s709_s3 + $0x8] sm:$0xff]  ;;  %v149_v7 = vld [vmem:[%s709_s3] sm:$0xff]  ;;  %v243_v17 = vld [vmem:[%s711_s5 + $0x18] sm:$0xff]  ;;  %s419_s21 = sshll.u32 %s580_s0, 4  ;;  %s420_s21 = int_to_ptr.vmem [resolvable:$true] %s419_s21 }
  0x1d   :  { %454 = vmatpush3.msra.mxu0 %v61_v1  ;;  %461 = vmatpush3.msra.mxu1 %v152_v4  ;;  %v429_v8 = vld [vmem:[%s708_s2] ss:$0 sm:$0xff]  ;;  %v242_v18 = vld [vmem:[%s711_s5 + $0x10] sm:$0xff]  ;;  %v241_v19 = vld [vmem:[%s711_s5 + $0x8] sm:$0xff]  ;;  %p553_p11 = scmp.lt.s32.totalorder %s420_s21, %s420_s21 }
  0x1e   :  { %455 = vmatprep.subr.mxu0 %v578_v0  ;;  %462 = vmatprep.subr.mxu1 %v578_v0  ;;  %v240_v20 = vld [vmem:[%s711_s5] sm:$0xff]  ;;  %v331_v30 = vld [vmem:[#allocation5 + $0x8] sm:$0xff]  ;;  %v330_v31 = vld [vmem:[#allocation5] sm:$0xff] }
  0x1f   :  { %456 = vmatpush3.msra.mxu0 %v60_v2  ;;  %463 = vmatpush3.msra.mxu1 %v151_v5  ;;  %v431_v21 = vld [vmem:[%s710_s4] ss:$0 sm:$0xff] }
  0x20   :  { %458 = vmatmul.mubr.msk.f32.vlgmr.msra.gmra.mxu0 %vm69_vm1, %v59_v3  ;;  %471 = vmatprep.subr.mxu0 %v578_v0  ;;  %v433_v32 = vld [vmem:[%s712_s6] ss:$0 sm:$0xff]  ;;  %s548_s6 = scalar_lea.vmem %s420_s21, 128 }
  0x21   :  { %479 = vmatprep.mubr.msk.f32.mxu0 %vm579_vm0, %v578_v0  ;;  %464 = vmatprep.subr.mxu1 %v578_v0  ;;  %v435_v41 = vld [vmem:[%s714_s8] ss:$0 sm:$0xff]  ;;  %p549_p10 = scmp.ne.s32.totalorder %s420_s21, %s548_s6  ;;  %p554_p12 = scmp.lt.s32.totalorder %s548_s6, %s548_s6 }
  0x22   :  { %465 = vmatpush3.msra.mxu1 %v150_v6  ;;  %472 = vmatpush3.msra.mxu0 %v243_v17 }
  0x23   :  { %466 = vmatprep.subr.mxu1 %v578_v0  ;;  %473 = vmatprep.subr.mxu0 %v578_v0  ;;  %p555_p13 = por %p554_p12, %p553_p11 }
  0x24   :  { %467 = vmatpush3.msra.mxu1 %v149_v7  ;;  %474 = vmatpush3.msra.mxu0 %v242_v18 }
  0x25   :  { %482 = vmatprep.subr.mxu1 %v578_v0  ;;  %475 = vmatprep.subr.mxu0 %v578_v0  ;;  %p556_p0 = pnand %p555_p13, %p549_p10 }
  0x26   :  { %476 = vmatpush3.msra.mxu0 %v241_v19 }
  0x27   :  { %477 = vmatprep.subr.mxu0 %v578_v0 }
  0x28   :  { %478 = vmatpush3.msra.mxu0 %v240_v20 }
  0xe0   :  { %v139_v9 = vpop.f32.mrf.mxu0 }
  0xe1   :  { %v140_v10 = vadd.f32 %v429_v8, %v139_v9 }
  0xe2   :  { %v459_v11 = vpop.f32.mrf.mxu0 }
  0xe3   :  { %v143_v12 = vsub.f32 0.0, %v140_v10 }
  0xe5   :  { %v144_v13 = vmul.f32 1.442695, %v143_v12 }
  0xe7   :  { %496 = vpow2.f32 %v144_v13 }
  0xf4   :  { %v497_v14 = vpop.eup %496 }
  0xf5   :  { %v146_v15 = vadd.f32 1.0, %v497_v14 }
  0xf7   :  { %498 = vrcp.f32 %v146_v15 }
 0x104   :  { %v499_v16 = vpop.eup %498 }
 0x105   :  { %469 = vmatmul.mubr.msk.f32.vlgmr.msra.gmra.mxu1 %vm160_vm2, %v499_v16 }
 0x106   :  { %486 = vmatprep.mubr.msk.f32.mxu1 %vm579_vm0, %v578_v0  ;;  %483 = vmatpush3.msra.mxu1 %v331_v30 }
 0x107   :  { %484 = vmatprep.subr.mxu1 %v578_v0 }
 0x108   :  { %485 = vmatpush3.msra.mxu1 %v330_v31 }
 0x1c5   :  { %v230_v22 = vpop.f32.mrf.mxu1 }
 0x1c6   :  { %v231_v23 = vadd.f32 %v431_v21, %v230_v22 }
 0x1c7   :  { %v470_v24 = vpop.f32.mrf.mxu1 }
 0x1c8   :  { %v234_v25 = vsub.f32 0.0, %v231_v23 }
 0x1ca   :  { %v235_v26 = vmul.f32 1.442695, %v234_v25 }
 0x1cc   :  { %500 = vpow2.f32 %v235_v26 }
 0x1d9   :  { %v501_v27 = vpop.eup %500 }
 0x1da   :  { %v237_v28 = vadd.f32 1.0, %v501_v27 }
 0x1dc   :  { %502 = vrcp.f32 %v237_v28 }
 0x1e9   :  { %v503_v29 = vpop.eup %502 }
 0x1ea   :  { %480 = vmatmul.mubr.msk.f32.vlgmr.msra.gmra.mxu0 %vm160_vm2, %v503_v29 }
 0x2aa   :  { %v320_v33 = vpop.f32.mrf.mxu0 }
 0x2ab   :  { %v321_v34 = vadd.f32 %v433_v32, %v320_v33 }
 0x2ac   :  { %v481_v35 = vpop.f32.mrf.mxu0 }
 0x2ad   :  { %v324_v36 = vsub.f32 0.0, %v321_v34 }
 0x2af   :  { %v325_v37 = vmul.f32 1.442695, %v324_v36 }
 0x2b1   :  { %504 = vpow2.f32 %v325_v37 }
 0x2be   :  { %v505_v38 = vpop.eup %504 }
 0x2bf   :  { %v327_v39 = vadd.f32 1.0, %v505_v38 }
 0x2c1   :  { %506 = vrcp.f32 %v327_v39 }
 0x2ce   :  { %v507_v40 = vpop.eup %506 }
 0x2cf   :  { %487 = vmatmul.mubr.msk.f32.vlgmr.msra.gmra.mxu1 %vm69_vm1, %v507_v40 }
 0x38f   :  { %v408_v42 = vpop.f32.mrf.mxu1 }
 0x390   :  { %v409_v43 = vadd.f32 %v435_v41, %v408_v42 }
 0x391   :  { %v488_v44 = vpop.f32.mrf.mxu1 }
 0x392   :  { %412 = vst [vmem:[#allocation7] sm:$0xff] %v409_v43 }
 0x393   :  { %559 = shalt.err (!%p556_p0)
}
 0x394   :  { %422 = dma.vmem_to_hbm [thread:$0]  %s420_s21, 128, %s715_s9, [#allocation4]  }
 0x395   :  { %572 = dma.done.wait [#allocation4], 128  }
 0x396   :  { %573 = vsyncadd [#allocation4], 4294967168 }
 0x397   :  { %426 = vsyncpa [#allocation3], 1 }
 0x398   :  { %427 = vsyncpa [#allocation6], 1 }
 0x399   :  { %428 = vsyncpa [#allocation4], 1 }

</bundles_post_ra>
